<compile_context>
chip_gen: v6e
topology: v6e:2x2x1
jax: 0.10.0
libtpu: 0.0.40
codegen_flags: <defaults>
</compile_context>

<pallas_src>
import functools

import jax
import jax.numpy as jnp
from jax.experimental import pallas as pl
from jax.experimental.pallas import tpu as pltpu


NUM_WORKERS = 3
N_SCORE = 6                                        # classes per score head
N_CONF = 11                                        # classes per confidence head
N_HEADS_CE = 2 * NUM_WORKERS                       # 6 cross-entropy heads
N_LOGITS = NUM_WORKERS * (N_SCORE + N_CONF) + 1    # 52 real logits (51 CE + 1 binary)
LANES = 128                                        # lane-padded fused head width
_HEAD_STARTS = (0, 6, 12, 18, 29, 40)
_HEAD_SIZES = (N_SCORE, N_SCORE, N_SCORE, N_CONF, N_CONF, N_CONF)
_CLS_LANE = N_LOGITS - 1                           # lane 51: binary-classifier logit
_BIN_LANE = N_HEADS_CE                             # output slab lane 6: rounded sigmoid
_LOSS_LANE = N_HEADS_CE + 1                        # output slab lane 7: loss bits


def pred_layer4workers_kernel(x_ref, lab_ref, wf_ref, bf_ref, out_ref, *, threshold):
    f32 = jnp.float32
    i32 = jnp.int32
    batch = x_ref.shape[0]

    # --- ONE fused matmul: outer projection folded into all 7 heads ----------
    logits = jnp.dot(x_ref[...], wf_ref[...],
                     preferred_element_type=f32) + bf_ref[...]      # (bs, 128)

    # --- static per-lane metadata from iota (no extra operands / DMAs) -------
    lane = jax.lax.broadcasted_iota(i32, (1, LANES), 1)
    ge = lambda v: (lane >= v).astype(i32)
    head_start = (6 * ge(6) + 6 * ge(12) + 6 * ge(18)
                  + 11 * ge(29) + 11 * ge(40) + 11 * ge(51) + ge(52))
    cls_idx = lane - head_start                       # within-head class index
    ce_mask = lane < _CLS_LANE                        # lanes 0..50: CE-head logits
    cls_mask = lane == _CLS_LANE                      # lane 51: binary logit
    head_masks = [jnp.logical_and(lane >= s, lane < s + n)
                  for s, n in zip(_HEAD_STARTS, _HEAD_SIZES)]

    # --- order-preserving int32 keys: per-head max+argmax in ONE reduction ---
    bits = pltpu.bitcast(logits, i32)
    key = jnp.where(bits < 0, bits ^ i32(0x7FFFFFFF), bits)   # monotone in logit value
    idx_key = jnp.where(ce_mask, 15 - cls_idx, 0)             # ties -> first index wins
    key = (key & i32(-16)) | idx_key
    neg_key = i32(jnp.iinfo(jnp.int32).min)

    lab = lab_ref[...]                                # (bs, 6) int32 labels

    pred_acc = jnp.zeros((batch, LANES), i32)
    max_lane = logits                                 # non-CE lanes keep exp(0)=1 below
    m_sum = jnp.zeros((batch, 1), f32)
    lab_lane = i32(-1)
    for h in range(N_HEADS_CE):
        kmax = jnp.max(jnp.where(head_masks[h], key, neg_key),
                       axis=-1, keepdims=True)        # (bs, 1) packed max+argmax
        am = 15 - (kmax & 15)                         # first-argmax class id
        pred_acc = pred_acc + jnp.where(lane == h, am, 0)
        mb = kmax & i32(-16)                          # un-pack the max value
        mb = jnp.where(mb < 0, mb ^ i32(0x7FFFFFFF), mb)
        m_h = pltpu.bitcast(mb, f32)                  # <= few ULP below true max: LSE still exact
        m_sum = m_sum + m_h
        max_lane = jnp.where(head_masks[h], m_h, max_lane)
        lab_lane = jnp.where(head_masks[h], lab[:, h:h + 1], lab_lane)

    # --- ONE exp over the whole (bs, 128) slab (single EUP pass) -------------
    e = jnp.exp(logits - max_lane)
    s_prod = jnp.ones((batch, 1), f32)
    for h in range(N_HEADS_CE):
        s_prod = s_prod * jnp.sum(jnp.where(head_masks[h], e, 0.0),
                                  axis=-1, keepdims=True)
    lse_sum = m_sum + jnp.log(s_prod)                 # sum of the 6 per-head logsumexps

    # Correct-class logits of all 6 CE heads live on disjoint lanes -> one sum.
    sel = jnp.logical_and(ce_mask, cls_idx == lab_lane)
    correct_sum = jnp.sum(jnp.where(sel, logits, 0.0), axis=-1, keepdims=True)
    ce_per_row = lse_sum - correct_sum                # (bs, 1)

    # --- binary classifier head (BCE with logits) -----------------------------
    z_cls = jnp.sum(jnp.where(cls_mask, logits, 0.0), axis=-1, keepdims=True)
    bf = lab[:, :NUM_WORKERS].astype(f32)             # score labels   (bs, 3)
    cf = lab[:, NUM_WORKERS:].astype(f32)             # confidence labels (bs, 3)
    y_true = (jnp.sum(bf * cf, axis=-1, keepdims=True)
              / jnp.sum(cf, axis=-1, keepdims=True))
    tgt = (y_true >= threshold).astype(f32)
    # log(1+u) with u = exp(-|z|) in (0,1]: equals log1p(u) to < 1 ULP here.
    bce_per_row = (jnp.maximum(z_cls, 0.0) - z_cls * tgt
                   + jnp.log(1.0 + jnp.exp(-jnp.abs(z_cls))))

    total = jnp.sum(ce_per_row + bce_per_row, axis=0, keepdims=True)   # (1, 1)
    loss_bits = pltpu.bitcast(total * f32(1.0 / (batch * 7)), i32)

    # --- single lane-dense (bs, 128) int32 output slab ------------------------
    # sigmoid(z).round().int()  ==  (z > 0)  (round-half-to-even at z == 0)
    bin_i = (z_cls > 0.0).astype(i32)
    pred_acc = pred_acc + jnp.where(lane == _BIN_LANE, bin_i, 0)
    pred_acc = pred_acc + jnp.where(lane == _LOSS_LANE, loss_bits, 0)
    out_ref[...] = pred_acc


def pred_layer4workers_forward(x, y, wp, bp, ws_list, bs_list, wc_list, bc_list,
                               wcls, bcls, threshold):
    bs, _ = x.shape
    hidden = wp.shape[0]
    hi = jax.lax.Precision.HIGHEST

    # ---- pack the 7 heads: [scores 0..2 | confs 0..2 | classifier], pad to 128
    w_heads = jnp.concatenate(list(ws_list) + list(wc_list) + [wcls], axis=0)   # (52, hidden)
    b_heads = jnp.concatenate(list(bs_list) + list(bc_list) + [bcls], axis=0)   # (52,)
    whT = jnp.zeros((hidden, LANES), jnp.float32).at[:, :N_LOGITS].set(w_heads.T)
    bh = jnp.zeros((1, LANES), jnp.float32).at[0, :N_LOGITS].set(b_heads)

    # ---- fold the outer projection into the heads (no nonlinearity between
    # them; eval-mode dropout is identity):  logits = x @ (Wp^T Wh^T) + (bp Wh^T + bh)
    w_fused = jnp.dot(wp.T, whT, precision=hi)                                  # (d_model, 128)
    b_fused = jnp.dot(bp.reshape(1, hidden), whT, precision=hi) + bh            # (1, 128)
    # TODO(synk): for production d_model, cast x/w_fused to bf16 (f32 accumulate)
    # on v6e/v7x and add a batch grid (dimension_semantics=("parallel",)) so
    # v7x's second TensorCore is used; unnecessary at these toy sizes.

    # ---- one packed label operand: [score labels | confidence labels] (bs, 6)
    labels = jnp.concatenate([y[:, 0, :], y[:, 1, :]], axis=1).astype(jnp.int32)

    out = pl.pallas_call(
        functools.partial(pred_layer4workers_kernel, threshold=float(threshold)),
        out_shape=jax.ShapeDtypeStruct((bs, LANES), jnp.int32),
    )(x, labels, w_fused, b_fused)

    y_pred = out[:, :N_HEADS_CE].reshape(bs, 2, NUM_WORKERS)[None]   # topK = 1 stack
    # TODO(synk): topK > 1 predictions use the external host-side numpy `top_k`
    # helper in the original module and are not translated to Pallas.
    bin_out = out[:, _BIN_LANE:_BIN_LANE + 1]
    loss = jax.lax.bitcast_convert_type(out[0, _LOSS_LANE], jnp.float32)
    return y_pred, loss, bin_out


# ---------------------------- pure-JAX reference -----------------------------
def _ce_mean(logits, labels):
    lse = jax.scipy.special.logsumexp(logits, axis=-1)
    correct = jnp.take_along_axis(logits, labels[:, None], axis=-1)[:, 0]
    return jnp.mean(lse - correct)


def reference_forward(x, y, wp, bp, ws_list, bs_list, wc_list, bc_list,
                      wcls, bcls, threshold):
    hi = jax.lax.Precision.HIGHEST
    h = jnp.dot(x, wp.T, precision=hi) + bp
    b_lab = y[:, 0, :]
    c_lab = y[:, 1, :]
    t_loss = 0.0
    preds_s, preds_c = [], []
    for i in range(NUM_WORKERS):
        s = jnp.dot(h, ws_list[i].T, precision=hi) + bs_list[i]
        t_loss = t_loss + _ce_mean(s, b_lab[:, i])
        preds_s.append(jnp.argmax(s, axis=-1))
        cl = jnp.dot(h, wc_list[i].T, precision=hi) + bc_list[i]
        t_loss = t_loss + _ce_mean(cl, c_lab[:, i])
        preds_c.append(jnp.argmax(cl, axis=-1))
    bf = b_lab.astype(jnp.float32)
    cf = c_lab.astype(jnp.float32)
    y_true = jnp.sum(bf * cf, axis=-1) / jnp.sum(cf, axis=-1)
    tgt = (y_true >= threshold).astype(jnp.float32)[:, None]
    z = jnp.dot(h, wcls.T, precision=hi) + bcls
    bce = jnp.mean(jnp.maximum(z, 0.0) - z * tgt + jnp.log1p(jnp.exp(-jnp.abs(z))))
    t_loss = t_loss + bce
    y_pred = jnp.stack([jnp.stack(preds_s, axis=1),
                        jnp.stack(preds_c, axis=1)], axis=1)[None].astype(jnp.int32)
    return y_pred, t_loss / 7.0, (z > 0.0).astype(jnp.int32)


if __name__ == "__main__":
    bs, d_model, hidden = 8, 64, 32
    threshold = 2.5

    key = jax.random.PRNGKey(0)
    ks = jax.random.split(key, 20)

    x = jax.random.normal(ks[0], (bs, d_model), jnp.float32)
    b_lab = jax.random.randint(ks[1], (bs, NUM_WORKERS), 0, N_SCORE, dtype=jnp.int32)
    c_lab = jax.random.randint(ks[2], (bs, NUM_WORKERS), 1, N_CONF, dtype=jnp.int32)
    y = jnp.stack([b_lab, c_lab], axis=1)                 # (bs, 2, 3) labels

    # parameters (PyTorch layouts: Linear weight is (out_features, in_features))
    wp = 0.1 * jax.random.normal(ks[3], (hidden, d_model), jnp.float32)
    bp = 0.1 * jax.random.normal(ks[4], (hidden,), jnp.float32)
    ws_list = [0.1 * jax.random.normal(ks[5 + i], (N_SCORE, hidden), jnp.float32)
               for i in range(NUM_WORKERS)]
    bs_list = [0.1 * jax.random.normal(ks[8 + i], (N_SCORE,), jnp.float32)
               for i in range(NUM_WORKERS)]
    wc_list = [0.1 * jax.random.normal(ks[11 + i], (N_CONF, hidden), jnp.float32)
               for i in range(NUM_WORKERS)]
    bc_list = [0.1 * jax.random.normal(ks[14 + i], (N_CONF,), jnp.float32)
               for i in range(NUM_WORKERS)]
    wcls = 0.1 * jax.random.normal(ks[17], (1, hidden), jnp.float32)
    bcls = 0.1 * jax.random.normal(ks[18], (1,), jnp.float32)

    y_pred, loss, scores = pred_layer4workers_forward(
        x, y, wp, bp, ws_list, bs_list, wc_list, bc_list, wcls, bcls, threshold)
    jax.block_until_ready((y_pred, loss, scores))

    y_pred_ref, loss_ref, scores_ref = reference_forward(
        x, y, wp, bp, ws_list, bs_list, wc_list, bc_list, wcls, bcls, threshold)

    assert y_pred.shape == (1, bs, 2, NUM_WORKERS)
    assert jnp.array_equal(y_pred, y_pred_ref)
    assert jnp.allclose(loss, loss_ref, rtol=1e-4, atol=1e-4)
    assert jnp.array_equal(scores, scores_ref)

    print("KERNEL_OK")
</pallas_src>

<mosaic_0001>
module attributes {stable_mosaic.version = 11 : i64} {
  func.func @pred_layer4workers_kernel(%arg0: memref<8x64xf32, #tpu.memory_space<vmem>>, %arg1: memref<8x6xi32, #tpu.memory_space<vmem>>, %arg2: memref<64x128xf32, #tpu.memory_space<vmem>>, %arg3: memref<1x128xf32, #tpu.memory_space<vmem>>, %arg4: memref<8x128xi32, #tpu.memory_space<vmem>>) attributes {dimension_semantics = [], scalar_prefetch = 0 : i64, scratch_operands = 0 : i64, tpu.core_type = #tpu.core_type<tc>} {
    %c0 = arith.constant 0 : index
    %c0_0 = arith.constant 0 : index
    %0 = vector.load %arg0[%c0, %c0_0] : memref<8x64xf32, #tpu.memory_space<vmem>>, vector<8x64xf32>
    %c0_1 = arith.constant 0 : index
    %c0_2 = arith.constant 0 : index
    %1 = vector.load %arg2[%c0_1, %c0_2] : memref<64x128xf32, #tpu.memory_space<vmem>>, vector<64x128xf32>
    %cst = arith.constant dense<0.000000e+00> : vector<8x128xf32>
    %2 = tpu.matmul %0, %1, %cst {dimension_numbers = #tpu.dot_dimension_numbers<[1], [0], [0], [1], [0, 0, 1, 1], [], []>} : vector<8x64xf32>, vector<64x128xf32>, vector<8x128xf32> -> vector<8x128xf32>
    %c0_3 = arith.constant 0 : index
    %c0_4 = arith.constant 0 : index
    %3 = vector.load %arg3[%c0_3, %c0_4] : memref<1x128xf32, #tpu.memory_space<vmem>>, vector<1x128xf32>
    %4 = vector.broadcast %3 : vector<1x128xf32> to vector<8x128xf32>
    %5 = arith.addf %2, %4 : vector<8x128xf32>
    %6 = tpu.iota {dimensions = array<i32: 1>} : vector<1x128xi32>
    %c6_i32 = arith.constant 6 : i32
    %7 = vector.broadcast %c6_i32 : i32 to vector<1x128xi32>
    %8 = arith.cmpi sge, %6, %7 : vector<1x128xi32>
    %9 = arith.extui %8 : vector<1x128xi1> to vector<1x128xi32>
    %c6_i32_5 = arith.constant 6 : i32
    %10 = vector.broadcast %c6_i32_5 : i32 to vector<1x128xi32>
    %11 = arith.muli %10, %9 : vector<1x128xi32>
    %c12_i32 = arith.constant 12 : i32
    %12 = vector.broadcast %c12_i32 : i32 to vector<1x128xi32>
    %13 = arith.cmpi sge, %6, %12 : vector<1x128xi32>
    %14 = arith.extui %13 : vector<1x128xi1> to vector<1x128xi32>
    %c6_i32_6 = arith.constant 6 : i32
    %15 = vector.broadcast %c6_i32_6 : i32 to vector<1x128xi32>
    %16 = arith.muli %15, %14 : vector<1x128xi32>
    %17 = arith.addi %11, %16 : vector<1x128xi32>
    %c18_i32 = arith.constant 18 : i32
    %18 = vector.broadcast %c18_i32 : i32 to vector<1x128xi32>
    %19 = arith.cmpi sge, %6, %18 : vector<1x128xi32>
    %20 = arith.extui %19 : vector<1x128xi1> to vector<1x128xi32>
    %c6_i32_7 = arith.constant 6 : i32
    %21 = vector.broadcast %c6_i32_7 : i32 to vector<1x128xi32>
    %22 = arith.muli %21, %20 : vector<1x128xi32>
    %23 = arith.addi %17, %22 : vector<1x128xi32>
    %c29_i32 = arith.constant 29 : i32
    %24 = vector.broadcast %c29_i32 : i32 to vector<1x128xi32>
    %25 = arith.cmpi sge, %6, %24 : vector<1x128xi32>
    %26 = arith.extui %25 : vector<1x128xi1> to vector<1x128xi32>
    %c11_i32 = arith.constant 11 : i32
    %27 = vector.broadcast %c11_i32 : i32 to vector<1x128xi32>
    %28 = arith.muli %27, %26 : vector<1x128xi32>
    %29 = arith.addi %23, %28 : vector<1x128xi32>
    %c40_i32 = arith.constant 40 : i32
    %30 = vector.broadcast %c40_i32 : i32 to vector<1x128xi32>
    %31 = arith.cmpi sge, %6, %30 : vector<1x128xi32>
    %32 = arith.extui %31 : vector<1x128xi1> to vector<1x128xi32>
    %c11_i32_8 = arith.constant 11 : i32
    %33 = vector.broadcast %c11_i32_8 : i32 to vector<1x128xi32>
    %34 = arith.muli %33, %32 : vector<1x128xi32>
    %35 = arith.addi %29, %34 : vector<1x128xi32>
    %c51_i32 = arith.constant 51 : i32
    %36 = vector.broadcast %c51_i32 : i32 to vector<1x128xi32>
    %37 = arith.cmpi sge, %6, %36 : vector<1x128xi32>
    %38 = arith.extui %37 : vector<1x128xi1> to vector<1x128xi32>
    %c11_i32_9 = arith.constant 11 : i32
    %39 = vector.broadcast %c11_i32_9 : i32 to vector<1x128xi32>
    %40 = arith.muli %39, %38 : vector<1x128xi32>
    %41 = arith.addi %35, %40 : vector<1x128xi32>
    %c52_i32 = arith.constant 52 : i32
    %42 = vector.broadcast %c52_i32 : i32 to vector<1x128xi32>
    %43 = arith.cmpi sge, %6, %42 : vector<1x128xi32>
    %44 = arith.extui %43 : vector<1x128xi1> to vector<1x128xi32>
    %45 = arith.addi %41, %44 : vector<1x128xi32>
    %46 = arith.subi %6, %45 : vector<1x128xi32>
    %c51_i32_10 = arith.constant 51 : i32
    %47 = vector.broadcast %c51_i32_10 : i32 to vector<1x128xi32>
    %48 = arith.cmpi slt, %6, %47 : vector<1x128xi32>
    %c51_i32_11 = arith.constant 51 : i32
    %49 = vector.broadcast %c51_i32_11 : i32 to vector<1x128xi32>
    %50 = arith.cmpi eq, %6, %49 : vector<1x128xi32>
    %c0_i32 = arith.constant 0 : i32
    %51 = vector.broadcast %c0_i32 : i32 to vector<1x128xi32>
    %52 = arith.cmpi sge, %6, %51 : vector<1x128xi32>
    %c6_i32_12 = arith.constant 6 : i32
    %53 = vector.broadcast %c6_i32_12 : i32 to vector<1x128xi32>
    %54 = arith.cmpi slt, %6, %53 : vector<1x128xi32>
    %55 = arith.andi %52, %54 : vector<1x128xi1>
    %c6_i32_13 = arith.constant 6 : i32
    %56 = vector.broadcast %c6_i32_13 : i32 to vector<1x128xi32>
    %57 = arith.cmpi sge, %6, %56 : vector<1x128xi32>
    %c12_i32_14 = arith.constant 12 : i32
    %58 = vector.broadcast %c12_i32_14 : i32 to vector<1x128xi32>
    %59 = arith.cmpi slt, %6, %58 : vector<1x128xi32>
    %60 = arith.andi %57, %59 : vector<1x128xi1>
    %c12_i32_15 = arith.constant 12 : i32
    %61 = vector.broadcast %c12_i32_15 : i32 to vector<1x128xi32>
    %62 = arith.cmpi sge, %6, %61 : vector<1x128xi32>
    %c18_i32_16 = arith.constant 18 : i32
    %63 = vector.broadcast %c18_i32_16 : i32 to vector<1x128xi32>
    %64 = arith.cmpi slt, %6, %63 : vector<1x128xi32>
    %65 = arith.andi %62, %64 : vector<1x128xi1>
    %c18_i32_17 = arith.constant 18 : i32
    %66 = vector.broadcast %c18_i32_17 : i32 to vector<1x128xi32>
    %67 = arith.cmpi sge, %6, %66 : vector<1x128xi32>
    %c29_i32_18 = arith.constant 29 : i32
    %68 = vector.broadcast %c29_i32_18 : i32 to vector<1x128xi32>
    %69 = arith.cmpi slt, %6, %68 : vector<1x128xi32>
    %70 = arith.andi %67, %69 : vector<1x128xi1>
    %c29_i32_19 = arith.constant 29 : i32
    %71 = vector.broadcast %c29_i32_19 : i32 to vector<1x128xi32>
    %72 = arith.cmpi sge, %6, %71 : vector<1x128xi32>
    %c40_i32_20 = arith.constant 40 : i32
    %73 = vector.broadcast %c40_i32_20 : i32 to vector<1x128xi32>
    %74 = arith.cmpi slt, %6, %73 : vector<1x128xi32>
    %75 = arith.andi %72, %74 : vector<1x128xi1>
    %c40_i32_21 = arith.constant 40 : i32
    %76 = vector.broadcast %c40_i32_21 : i32 to vector<1x128xi32>
    %77 = arith.cmpi sge, %6, %76 : vector<1x128xi32>
    %c51_i32_22 = arith.constant 51 : i32
    %78 = vector.broadcast %c51_i32_22 : i32 to vector<1x128xi32>
    %79 = arith.cmpi slt, %6, %78 : vector<1x128xi32>
    %80 = arith.andi %77, %79 : vector<1x128xi1>
    %81 = tpu.bitcast %5 : vector<8x128xf32> -> vector<8x128xi32>
    %c0_i32_23 = arith.constant 0 : i32
    %82 = vector.broadcast %c0_i32_23 : i32 to vector<8x128xi32>
    %83 = arith.cmpi slt, %81, %82 : vector<8x128xi32>
    %c2147483647_i32 = arith.constant 2147483647 : i32
    %84 = vector.broadcast %c2147483647_i32 : i32 to vector<8x128xi32>
    %85 = arith.xori %81, %84 : vector<8x128xi32>
    %86 = arith.select %83, %85, %81 : vector<8x128xi1>, vector<8x128xi32>
    %c15_i32 = arith.constant 15 : i32
    %87 = vector.broadcast %c15_i32 : i32 to vector<1x128xi32>
    %88 = arith.subi %87, %46 : vector<1x128xi32>
    %c0_i32_24 = arith.constant 0 : i32
    %89 = vector.broadcast %c0_i32_24 : i32 to vector<1x128xi32>
    %90 = arith.select %48, %88, %89 : vector<1x128xi1>, vector<1x128xi32>
    %c-16_i32 = arith.constant -16 : i32
    %91 = vector.broadcast %c-16_i32 : i32 to vector<8x128xi32>
    %92 = arith.andi %86, %91 : vector<8x128xi32>
    %93 = vector.broadcast %90 : vector<1x128xi32> to vector<8x128xi32>
    %94 = arith.ori %92, %93 : vector<8x128xi32>
    %c0_25 = arith.constant 0 : index
    %c0_26 = arith.constant 0 : index
    %95 = vector.load %arg1[%c0_25, %c0_26] : memref<8x6xi32, #tpu.memory_space<vmem>>, vector<8x6xi32>
    %c0_i32_27 = arith.constant 0 : i32
    %96 = vector.broadcast %c0_i32_27 : i32 to vector<8x128xi32>
    %cst_28 = arith.constant 0.000000e+00 : f32
    %97 = vector.broadcast %cst_28 : f32 to vector<8x1xf32>
    %c-2147483648_i32 = arith.constant -2147483648 : i32
    %98 = vector.shape_cast %55 : vector<1x128xi1> to vector<1x128xi1>
    %99 = vector.broadcast %98 : vector<1x128xi1> to vector<8x128xi1>
    %100 = vector.broadcast %c-2147483648_i32 : i32 to vector<8x128xi32>
    %101 = arith.select %99, %94, %100 : vector<8x128xi1>, vector<8x128xi32>
    %cst_29 = arith.constant dense<-2147483648> : vector<8xi32>
    %102 = vector.multi_reduction <maxsi>, %101, %cst_29 [1] : vector<8x128xi32> to vector<8xi32>
    %103 = vector.shape_cast %102 : vector<8xi32> to vector<8x1xi32>
    %c15_i32_30 = arith.constant 15 : i32
    %104 = vector.broadcast %c15_i32_30 : i32 to vector<8x1xi32>
    %105 = arith.andi %103, %104 : vector<8x1xi32>
    %c15_i32_31 = arith.constant 15 : i32
    %106 = vector.broadcast %c15_i32_31 : i32 to vector<8x1xi32>
    %107 = arith.subi %106, %105 : vector<8x1xi32>
    %c0_i32_32 = arith.constant 0 : i32
    %108 = vector.broadcast %c0_i32_32 : i32 to vector<1x128xi32>
    %109 = arith.cmpi eq, %6, %108 : vector<1x128xi32>
    %c0_i32_33 = arith.constant 0 : i32
    %110 = vector.shape_cast %109 : vector<1x128xi1> to vector<1x128xi1>
    %111 = vector.broadcast %110 : vector<1x128xi1> to vector<8x128xi1>
    %112 = vector.shape_cast %107 : vector<8x1xi32> to vector<8x1xi32>
    %113 = vector.broadcast %112 : vector<8x1xi32> to vector<8x128xi32>
    %114 = vector.broadcast %c0_i32_33 : i32 to vector<8x128xi32>
    %115 = arith.select %111, %113, %114 : vector<8x128xi1>, vector<8x128xi32>
    %116 = arith.addi %96, %115 : vector<8x128xi32>
    %c-16_i32_34 = arith.constant -16 : i32
    %117 = vector.broadcast %c-16_i32_34 : i32 to vector<8x1xi32>
    %118 = arith.andi %103, %117 : vector<8x1xi32>
    %c0_i32_35 = arith.constant 0 : i32
    %119 = vector.broadcast %c0_i32_35 : i32 to vector<8x1xi32>
    %120 = arith.cmpi slt, %118, %119 : vector<8x1xi32>
    %c2147483647_i32_36 = arith.constant 2147483647 : i32
    %121 = vector.broadcast %c2147483647_i32_36 : i32 to vector<8x1xi32>
    %122 = arith.xori %118, %121 : vector<8x1xi32>
    %123 = arith.select %120, %122, %118 : vector<8x1xi1>, vector<8x1xi32>
    %124 = tpu.bitcast %123 : vector<8x1xi32> -> vector<8x1xf32>
    %125 = arith.addf %97, %124 : vector<8x1xf32>
    %126 = vector.shape_cast %55 : vector<1x128xi1> to vector<1x128xi1>
    %127 = vector.broadcast %126 : vector<1x128xi1> to vector<8x128xi1>
    %128 = vector.shape_cast %124 : vector<8x1xf32> to vector<8x1xf32>
    %129 = vector.broadcast %128 : vector<8x1xf32> to vector<8x128xf32>
    %130 = arith.select %127, %129, %5 : vector<8x128xi1>, vector<8x128xf32>
    %131 = vector.extract_strided_slice %95 {offsets = [0, 0], sizes = [8, 1], strides = [1, 1]} : vector<8x6xi32> to vector<8x1xi32>
    %c-1_i32 = arith.constant -1 : i32
    %132 = vector.shape_cast %55 : vector<1x128xi1> to vector<1x128xi1>
    %133 = vector.broadcast %132 : vector<1x128xi1> to vector<8x128xi1>
    %134 = vector.shape_cast %131 : vector<8x1xi32> to vector<8x1xi32>
    %135 = vector.broadcast %134 : vector<8x1xi32> to vector<8x128xi32>
    %136 = vector.broadcast %c-1_i32 : i32 to vector<8x128xi32>
    %137 = arith.select %133, %135, %136 : vector<8x128xi1>, vector<8x128xi32>
    %c-2147483648_i32_37 = arith.constant -2147483648 : i32
    %138 = vector.shape_cast %60 : vector<1x128xi1> to vector<1x128xi1>
    %139 = vector.broadcast %138 : vector<1x128xi1> to vector<8x128xi1>
    %140 = vector.broadcast %c-2147483648_i32_37 : i32 to vector<8x128xi32>
    %141 = arith.select %139, %94, %140 : vector<8x128xi1>, vector<8x128xi32>
    %cst_38 = arith.constant dense<-2147483648> : vector<8xi32>
    %142 = vector.multi_reduction <maxsi>, %141, %cst_38 [1] : vector<8x128xi32> to vector<8xi32>
    %143 = vector.shape_cast %142 : vector<8xi32> to vector<8x1xi32>
    %c15_i32_39 = arith.constant 15 : i32
    %144 = vector.broadcast %c15_i32_39 : i32 to vector<8x1xi32>
    %145 = arith.andi %143, %144 : vector<8x1xi32>
    %c15_i32_40 = arith.constant 15 : i32
    %146 = vector.broadcast %c15_i32_40 : i32 to vector<8x1xi32>
    %147 = arith.subi %146, %145 : vector<8x1xi32>
    %c1_i32 = arith.constant 1 : i32
    %148 = vector.broadcast %c1_i32 : i32 to vector<1x128xi32>
    %149 = arith.cmpi eq, %6, %148 : vector<1x128xi32>
    %c0_i32_41 = arith.constant 0 : i32
    %150 = vector.shape_cast %149 : vector<1x128xi1> to vector<1x128xi1>
    %151 = vector.broadcast %150 : vector<1x128xi1> to vector<8x128xi1>
    %152 = vector.shape_cast %147 : vector<8x1xi32> to vector<8x1xi32>
    %153 = vector.broadcast %152 : vector<8x1xi32> to vector<8x128xi32>
    %154 = vector.broadcast %c0_i32_41 : i32 to vector<8x128xi32>
    %155 = arith.select %151, %153, %154 : vector<8x128xi1>, vector<8x128xi32>
    %156 = arith.addi %116, %155 : vector<8x128xi32>
    %c-16_i32_42 = arith.constant -16 : i32
    %157 = vector.broadcast %c-16_i32_42 : i32 to vector<8x1xi32>
    %158 = arith.andi %143, %157 : vector<8x1xi32>
    %c0_i32_43 = arith.constant 0 : i32
    %159 = vector.broadcast %c0_i32_43 : i32 to vector<8x1xi32>
    %160 = arith.cmpi slt, %158, %159 : vector<8x1xi32>
    %c2147483647_i32_44 = arith.constant 2147483647 : i32
    %161 = vector.broadcast %c2147483647_i32_44 : i32 to vector<8x1xi32>
    %162 = arith.xori %158, %161 : vector<8x1xi32>
    %163 = arith.select %160, %162, %158 : vector<8x1xi1>, vector<8x1xi32>
    %164 = tpu.bitcast %163 : vector<8x1xi32> -> vector<8x1xf32>
    %165 = arith.addf %125, %164 : vector<8x1xf32>
    %166 = vector.shape_cast %60 : vector<1x128xi1> to vector<1x128xi1>
    %167 = vector.broadcast %166 : vector<1x128xi1> to vector<8x128xi1>
    %168 = vector.shape_cast %164 : vector<8x1xf32> to vector<8x1xf32>
    %169 = vector.broadcast %168 : vector<8x1xf32> to vector<8x128xf32>
    %170 = arith.select %167, %169, %130 : vector<8x128xi1>, vector<8x128xf32>
    %171 = vector.extract_strided_slice %95 {offsets = [0, 1], sizes = [8, 1], strides = [1, 1]} : vector<8x6xi32> to vector<8x1xi32>
    %172 = vector.shape_cast %60 : vector<1x128xi1> to vector<1x128xi1>
    %173 = vector.broadcast %172 : vector<1x128xi1> to vector<8x128xi1>
    %174 = vector.shape_cast %171 : vector<8x1xi32> to vector<8x1xi32>
    %175 = vector.broadcast %174 : vector<8x1xi32> to vector<8x128xi32>
    %176 = arith.select %173, %175, %137 : vector<8x128xi1>, vector<8x128xi32>
    %c-2147483648_i32_45 = arith.constant -2147483648 : i32
    %177 = vector.shape_cast %65 : vector<1x128xi1> to vector<1x128xi1>
    %178 = vector.broadcast %177 : vector<1x128xi1> to vector<8x128xi1>
    %179 = vector.broadcast %c-2147483648_i32_45 : i32 to vector<8x128xi32>
    %180 = arith.select %178, %94, %179 : vector<8x128xi1>, vector<8x128xi32>
    %cst_46 = arith.constant dense<-2147483648> : vector<8xi32>
    %181 = vector.multi_reduction <maxsi>, %180, %cst_46 [1] : vector<8x128xi32> to vector<8xi32>
    %182 = vector.shape_cast %181 : vector<8xi32> to vector<8x1xi32>
    %c15_i32_47 = arith.constant 15 : i32
    %183 = vector.broadcast %c15_i32_47 : i32 to vector<8x1xi32>
    %184 = arith.andi %182, %183 : vector<8x1xi32>
    %c15_i32_48 = arith.constant 15 : i32
    %185 = vector.broadcast %c15_i32_48 : i32 to vector<8x1xi32>
    %186 = arith.subi %185, %184 : vector<8x1xi32>
    %c2_i32 = arith.constant 2 : i32
    %187 = vector.broadcast %c2_i32 : i32 to vector<1x128xi32>
    %188 = arith.cmpi eq, %6, %187 : vector<1x128xi32>
    %c0_i32_49 = arith.constant 0 : i32
    %189 = vector.shape_cast %188 : vector<1x128xi1> to vector<1x128xi1>
    %190 = vector.broadcast %189 : vector<1x128xi1> to vector<8x128xi1>
    %191 = vector.shape_cast %186 : vector<8x1xi32> to vector<8x1xi32>
    %192 = vector.broadcast %191 : vector<8x1xi32> to vector<8x128xi32>
    %193 = vector.broadcast %c0_i32_49 : i32 to vector<8x128xi32>
    %194 = arith.select %190, %192, %193 : vector<8x128xi1>, vector<8x128xi32>
    %195 = arith.addi %156, %194 : vector<8x128xi32>
    %c-16_i32_50 = arith.constant -16 : i32
    %196 = vector.broadcast %c-16_i32_50 : i32 to vector<8x1xi32>
    %197 = arith.andi %182, %196 : vector<8x1xi32>
    %c0_i32_51 = arith.constant 0 : i32
    %198 = vector.broadcast %c0_i32_51 : i32 to vector<8x1xi32>
    %199 = arith.cmpi slt, %197, %198 : vector<8x1xi32>
    %c2147483647_i32_52 = arith.constant 2147483647 : i32
    %200 = vector.broadcast %c2147483647_i32_52 : i32 to vector<8x1xi32>
    %201 = arith.xori %197, %200 : vector<8x1xi32>
    %202 = arith.select %199, %201, %197 : vector<8x1xi1>, vector<8x1xi32>
    %203 = tpu.bitcast %202 : vector<8x1xi32> -> vector<8x1xf32>
    %204 = arith.addf %165, %203 : vector<8x1xf32>
    %205 = vector.shape_cast %65 : vector<1x128xi1> to vector<1x128xi1>
    %206 = vector.broadcast %205 : vector<1x128xi1> to vector<8x128xi1>
    %207 = vector.shape_cast %203 : vector<8x1xf32> to vector<8x1xf32>
    %208 = vector.broadcast %207 : vector<8x1xf32> to vector<8x128xf32>
    %209 = arith.select %206, %208, %170 : vector<8x128xi1>, vector<8x128xf32>
    %210 = vector.extract_strided_slice %95 {offsets = [0, 2], sizes = [8, 1], strides = [1, 1]} : vector<8x6xi32> to vector<8x1xi32>
    %211 = vector.shape_cast %65 : vector<1x128xi1> to vector<1x128xi1>
    %212 = vector.broadcast %211 : vector<1x128xi1> to vector<8x128xi1>
    %213 = vector.shape_cast %210 : vector<8x1xi32> to vector<8x1xi32>
    %214 = vector.broadcast %213 : vector<8x1xi32> to vector<8x128xi32>
    %215 = arith.select %212, %214, %176 : vector<8x128xi1>, vector<8x128xi32>
    %c-2147483648_i32_53 = arith.constant -2147483648 : i32
    %216 = vector.shape_cast %70 : vector<1x128xi1> to vector<1x128xi1>
    %217 = vector.broadcast %216 : vector<1x128xi1> to vector<8x128xi1>
    %218 = vector.broadcast %c-2147483648_i32_53 : i32 to vector<8x128xi32>
    %219 = arith.select %217, %94, %218 : vector<8x128xi1>, vector<8x128xi32>
    %cst_54 = arith.constant dense<-2147483648> : vector<8xi32>
    %220 = vector.multi_reduction <maxsi>, %219, %cst_54 [1] : vector<8x128xi32> to vector<8xi32>
    %221 = vector.shape_cast %220 : vector<8xi32> to vector<8x1xi32>
    %c15_i32_55 = arith.constant 15 : i32
    %222 = vector.broadcast %c15_i32_55 : i32 to vector<8x1xi32>
    %223 = arith.andi %221, %222 : vector<8x1xi32>
    %c15_i32_56 = arith.constant 15 : i32
    %224 = vector.broadcast %c15_i32_56 : i32 to vector<8x1xi32>
    %225 = arith.subi %224, %223 : vector<8x1xi32>
    %c3_i32 = arith.constant 3 : i32
    %226 = vector.broadcast %c3_i32 : i32 to vector<1x128xi32>
    %227 = arith.cmpi eq, %6, %226 : vector<1x128xi32>
    %c0_i32_57 = arith.constant 0 : i32
    %228 = vector.shape_cast %227 : vector<1x128xi1> to vector<1x128xi1>
    %229 = vector.broadcast %228 : vector<1x128xi1> to vector<8x128xi1>
    %230 = vector.shape_cast %225 : vector<8x1xi32> to vector<8x1xi32>
    %231 = vector.broadcast %230 : vector<8x1xi32> to vector<8x128xi32>
    %232 = vector.broadcast %c0_i32_57 : i32 to vector<8x128xi32>
    %233 = arith.select %229, %231, %232 : vector<8x128xi1>, vector<8x128xi32>
    %234 = arith.addi %195, %233 : vector<8x128xi32>
    %c-16_i32_58 = arith.constant -16 : i32
    %235 = vector.broadcast %c-16_i32_58 : i32 to vector<8x1xi32>
    %236 = arith.andi %221, %235 : vector<8x1xi32>
    %c0_i32_59 = arith.constant 0 : i32
    %237 = vector.broadcast %c0_i32_59 : i32 to vector<8x1xi32>
    %238 = arith.cmpi slt, %236, %237 : vector<8x1xi32>
    %c2147483647_i32_60 = arith.constant 2147483647 : i32
    %239 = vector.broadcast %c2147483647_i32_60 : i32 to vector<8x1xi32>
    %240 = arith.xori %236, %239 : vector<8x1xi32>
    %241 = arith.select %238, %240, %236 : vector<8x1xi1>, vector<8x1xi32>
    %242 = tpu.bitcast %241 : vector<8x1xi32> -> vector<8x1xf32>
    %243 = arith.addf %204, %242 : vector<8x1xf32>
    %244 = vector.shape_cast %70 : vector<1x128xi1> to vector<1x128xi1>
    %245 = vector.broadcast %244 : vector<1x128xi1> to vector<8x128xi1>
    %246 = vector.shape_cast %242 : vector<8x1xf32> to vector<8x1xf32>
    %247 = vector.broadcast %246 : vector<8x1xf32> to vector<8x128xf32>
    %248 = arith.select %245, %247, %209 : vector<8x128xi1>, vector<8x128xf32>
    %249 = vector.extract_strided_slice %95 {offsets = [0, 3], sizes = [8, 1], strides = [1, 1]} : vector<8x6xi32> to vector<8x1xi32>
    %250 = vector.shape_cast %70 : vector<1x128xi1> to vector<1x128xi1>
    %251 = vector.broadcast %250 : vector<1x128xi1> to vector<8x128xi1>
    %252 = vector.shape_cast %249 : vector<8x1xi32> to vector<8x1xi32>
    %253 = vector.broadcast %252 : vector<8x1xi32> to vector<8x128xi32>
    %254 = arith.select %251, %253, %215 : vector<8x128xi1>, vector<8x128xi32>
    %c-2147483648_i32_61 = arith.constant -2147483648 : i32
    %255 = vector.shape_cast %75 : vector<1x128xi1> to vector<1x128xi1>
    %256 = vector.broadcast %255 : vector<1x128xi1> to vector<8x128xi1>
    %257 = vector.broadcast %c-2147483648_i32_61 : i32 to vector<8x128xi32>
    %258 = arith.select %256, %94, %257 : vector<8x128xi1>, vector<8x128xi32>
    %cst_62 = arith.constant dense<-2147483648> : vector<8xi32>
    %259 = vector.multi_reduction <maxsi>, %258, %cst_62 [1] : vector<8x128xi32> to vector<8xi32>
    %260 = vector.shape_cast %259 : vector<8xi32> to vector<8x1xi32>
    %c15_i32_63 = arith.constant 15 : i32
    %261 = vector.broadcast %c15_i32_63 : i32 to vector<8x1xi32>
    %262 = arith.andi %260, %261 : vector<8x1xi32>
    %c15_i32_64 = arith.constant 15 : i32
    %263 = vector.broadcast %c15_i32_64 : i32 to vector<8x1xi32>
    %264 = arith.subi %263, %262 : vector<8x1xi32>
    %c4_i32 = arith.constant 4 : i32
    %265 = vector.broadcast %c4_i32 : i32 to vector<1x128xi32>
    %266 = arith.cmpi eq, %6, %265 : vector<1x128xi32>
    %c0_i32_65 = arith.constant 0 : i32
    %267 = vector.shape_cast %266 : vector<1x128xi1> to vector<1x128xi1>
    %268 = vector.broadcast %267 : vector<1x128xi1> to vector<8x128xi1>
    %269 = vector.shape_cast %264 : vector<8x1xi32> to vector<8x1xi32>
    %270 = vector.broadcast %269 : vector<8x1xi32> to vector<8x128xi32>
    %271 = vector.broadcast %c0_i32_65 : i32 to vector<8x128xi32>
    %272 = arith.select %268, %270, %271 : vector<8x128xi1>, vector<8x128xi32>
    %273 = arith.addi %234, %272 : vector<8x128xi32>
    %c-16_i32_66 = arith.constant -16 : i32
    %274 = vector.broadcast %c-16_i32_66 : i32 to vector<8x1xi32>
    %275 = arith.andi %260, %274 : vector<8x1xi32>
    %c0_i32_67 = arith.constant 0 : i32
    %276 = vector.broadcast %c0_i32_67 : i32 to vector<8x1xi32>
    %277 = arith.cmpi slt, %275, %276 : vector<8x1xi32>
    %c2147483647_i32_68 = arith.constant 2147483647 : i32
    %278 = vector.broadcast %c2147483647_i32_68 : i32 to vector<8x1xi32>
    %279 = arith.xori %275, %278 : vector<8x1xi32>
    %280 = arith.select %277, %279, %275 : vector<8x1xi1>, vector<8x1xi32>
    %281 = tpu.bitcast %280 : vector<8x1xi32> -> vector<8x1xf32>
    %282 = arith.addf %243, %281 : vector<8x1xf32>
    %283 = vector.shape_cast %75 : vector<1x128xi1> to vector<1x128xi1>
    %284 = vector.broadcast %283 : vector<1x128xi1> to vector<8x128xi1>
    %285 = vector.shape_cast %281 : vector<8x1xf32> to vector<8x1xf32>
    %286 = vector.broadcast %285 : vector<8x1xf32> to vector<8x128xf32>
    %287 = arith.select %284, %286, %248 : vector<8x128xi1>, vector<8x128xf32>
    %288 = vector.extract_strided_slice %95 {offsets = [0, 4], sizes = [8, 1], strides = [1, 1]} : vector<8x6xi32> to vector<8x1xi32>
    %289 = vector.shape_cast %75 : vector<1x128xi1> to vector<1x128xi1>
    %290 = vector.broadcast %289 : vector<1x128xi1> to vector<8x128xi1>
    %291 = vector.shape_cast %288 : vector<8x1xi32> to vector<8x1xi32>
    %292 = vector.broadcast %291 : vector<8x1xi32> to vector<8x128xi32>
    %293 = arith.select %290, %292, %254 : vector<8x128xi1>, vector<8x128xi32>
    %c-2147483648_i32_69 = arith.constant -2147483648 : i32
    %294 = vector.shape_cast %80 : vector<1x128xi1> to vector<1x128xi1>
    %295 = vector.broadcast %294 : vector<1x128xi1> to vector<8x128xi1>
    %296 = vector.broadcast %c-2147483648_i32_69 : i32 to vector<8x128xi32>
    %297 = arith.select %295, %94, %296 : vector<8x128xi1>, vector<8x128xi32>
    %cst_70 = arith.constant dense<-2147483648> : vector<8xi32>
    %298 = vector.multi_reduction <maxsi>, %297, %cst_70 [1] : vector<8x128xi32> to vector<8xi32>
    %299 = vector.shape_cast %298 : vector<8xi32> to vector<8x1xi32>
    %c15_i32_71 = arith.constant 15 : i32
    %300 = vector.broadcast %c15_i32_71 : i32 to vector<8x1xi32>
    %301 = arith.andi %299, %300 : vector<8x1xi32>
    %c15_i32_72 = arith.constant 15 : i32
    %302 = vector.broadcast %c15_i32_72 : i32 to vector<8x1xi32>
    %303 = arith.subi %302, %301 : vector<8x1xi32>
    %c5_i32 = arith.constant 5 : i32
    %304 = vector.broadcast %c5_i32 : i32 to vector<1x128xi32>
    %305 = arith.cmpi eq, %6, %304 : vector<1x128xi32>
    %c0_i32_73 = arith.constant 0 : i32
    %306 = vector.shape_cast %305 : vector<1x128xi1> to vector<1x128xi1>
    %307 = vector.broadcast %306 : vector<1x128xi1> to vector<8x128xi1>
    %308 = vector.shape_cast %303 : vector<8x1xi32> to vector<8x1xi32>
    %309 = vector.broadcast %308 : vector<8x1xi32> to vector<8x128xi32>
    %310 = vector.broadcast %c0_i32_73 : i32 to vector<8x128xi32>
    %311 = arith.select %307, %309, %310 : vector<8x128xi1>, vector<8x128xi32>
    %312 = arith.addi %273, %311 : vector<8x128xi32>
    %c-16_i32_74 = arith.constant -16 : i32
    %313 = vector.broadcast %c-16_i32_74 : i32 to vector<8x1xi32>
    %314 = arith.andi %299, %313 : vector<8x1xi32>
    %c0_i32_75 = arith.constant 0 : i32
    %315 = vector.broadcast %c0_i32_75 : i32 to vector<8x1xi32>
    %316 = arith.cmpi slt, %314, %315 : vector<8x1xi32>
    %c2147483647_i32_76 = arith.constant 2147483647 : i32
    %317 = vector.broadcast %c2147483647_i32_76 : i32 to vector<8x1xi32>
    %318 = arith.xori %314, %317 : vector<8x1xi32>
    %319 = arith.select %316, %318, %314 : vector<8x1xi1>, vector<8x1xi32>
    %320 = tpu.bitcast %319 : vector<8x1xi32> -> vector<8x1xf32>
    %321 = arith.addf %282, %320 : vector<8x1xf32>
    %322 = vector.shape_cast %80 : vector<1x128xi1> to vector<1x128xi1>
    %323 = vector.broadcast %322 : vector<1x128xi1> to vector<8x128xi1>
    %324 = vector.shape_cast %320 : vector<8x1xf32> to vector<8x1xf32>
    %325 = vector.broadcast %324 : vector<8x1xf32> to vector<8x128xf32>
    %326 = arith.select %323, %325, %287 : vector<8x128xi1>, vector<8x128xf32>
    %327 = vector.extract_strided_slice %95 {offsets = [0, 5], sizes = [8, 1], strides = [1, 1]} : vector<8x6xi32> to vector<8x1xi32>
    %328 = vector.shape_cast %80 : vector<1x128xi1> to vector<1x128xi1>
    %329 = vector.broadcast %328 : vector<1x128xi1> to vector<8x128xi1>
    %330 = vector.shape_cast %327 : vector<8x1xi32> to vector<8x1xi32>
    %331 = vector.broadcast %330 : vector<8x1xi32> to vector<8x128xi32>
    %332 = arith.select %329, %331, %293 : vector<8x128xi1>, vector<8x128xi32>
    %333 = arith.subf %5, %326 : vector<8x128xf32>
    %334 = math.exp %333 : vector<8x128xf32>
    %cst_77 = arith.constant 1.000000e+00 : f32
    %335 = vector.broadcast %cst_77 : f32 to vector<8x1xf32>
    %cst_78 = arith.constant 0.000000e+00 : f32
    %336 = vector.shape_cast %55 : vector<1x128xi1> to vector<1x128xi1>
    %337 = vector.broadcast %336 : vector<1x128xi1> to vector<8x128xi1>
    %338 = vector.broadcast %cst_78 : f32 to vector<8x128xf32>
    %339 = arith.select %337, %334, %338 : vector<8x128xi1>, vector<8x128xf32>
    %cst_79 = arith.constant dense<0.000000e+00> : vector<8xf32>
    %340 = vector.multi_reduction <add>, %339, %cst_79 [1] : vector<8x128xf32> to vector<8xf32>
    %341 = vector.shape_cast %340 : vector<8xf32> to vector<8x1xf32>
    %342 = arith.mulf %335, %341 : vector<8x1xf32>
    %cst_80 = arith.constant 0.000000e+00 : f32
    %343 = vector.shape_cast %60 : vector<1x128xi1> to vector<1x128xi1>
    %344 = vector.broadcast %343 : vector<1x128xi1> to vector<8x128xi1>
    %345 = vector.broadcast %cst_80 : f32 to vector<8x128xf32>
    %346 = arith.select %344, %334, %345 : vector<8x128xi1>, vector<8x128xf32>
    %cst_81 = arith.constant dense<0.000000e+00> : vector<8xf32>
    %347 = vector.multi_reduction <add>, %346, %cst_81 [1] : vector<8x128xf32> to vector<8xf32>
    %348 = vector.shape_cast %347 : vector<8xf32> to vector<8x1xf32>
    %349 = arith.mulf %342, %348 : vector<8x1xf32>
    %cst_82 = arith.constant 0.000000e+00 : f32
    %350 = vector.shape_cast %65 : vector<1x128xi1> to vector<1x128xi1>
    %351 = vector.broadcast %350 : vector<1x128xi1> to vector<8x128xi1>
    %352 = vector.broadcast %cst_82 : f32 to vector<8x128xf32>
    %353 = arith.select %351, %334, %352 : vector<8x128xi1>, vector<8x128xf32>
    %cst_83 = arith.constant dense<0.000000e+00> : vector<8xf32>
    %354 = vector.multi_reduction <add>, %353, %cst_83 [1] : vector<8x128xf32> to vector<8xf32>
    %355 = vector.shape_cast %354 : vector<8xf32> to vector<8x1xf32>
    %356 = arith.mulf %349, %355 : vector<8x1xf32>
    %cst_84 = arith.constant 0.000000e+00 : f32
    %357 = vector.shape_cast %70 : vector<1x128xi1> to vector<1x128xi1>
    %358 = vector.broadcast %357 : vector<1x128xi1> to vector<8x128xi1>
    %359 = vector.broadcast %cst_84 : f32 to vector<8x128xf32>
    %360 = arith.select %358, %334, %359 : vector<8x128xi1>, vector<8x128xf32>
    %cst_85 = arith.constant dense<0.000000e+00> : vector<8xf32>
    %361 = vector.multi_reduction <add>, %360, %cst_85 [1] : vector<8x128xf32> to vector<8xf32>
    %362 = vector.shape_cast %361 : vector<8xf32> to vector<8x1xf32>
    %363 = arith.mulf %356, %362 : vector<8x1xf32>
    %cst_86 = arith.constant 0.000000e+00 : f32
    %364 = vector.shape_cast %75 : vector<1x128xi1> to vector<1x128xi1>
    %365 = vector.broadcast %364 : vector<1x128xi1> to vector<8x128xi1>
    %366 = vector.broadcast %cst_86 : f32 to vector<8x128xf32>
    %367 = arith.select %365, %334, %366 : vector<8x128xi1>, vector<8x128xf32>
    %cst_87 = arith.constant dense<0.000000e+00> : vector<8xf32>
    %368 = vector.multi_reduction <add>, %367, %cst_87 [1] : vector<8x128xf32> to vector<8xf32>
    %369 = vector.shape_cast %368 : vector<8xf32> to vector<8x1xf32>
    %370 = arith.mulf %363, %369 : vector<8x1xf32>
    %cst_88 = arith.constant 0.000000e+00 : f32
    %371 = vector.shape_cast %80 : vector<1x128xi1> to vector<1x128xi1>
    %372 = vector.broadcast %371 : vector<1x128xi1> to vector<8x128xi1>
    %373 = vector.broadcast %cst_88 : f32 to vector<8x128xf32>
    %374 = arith.select %372, %334, %373 : vector<8x128xi1>, vector<8x128xf32>
    %cst_89 = arith.constant dense<0.000000e+00> : vector<8xf32>
    %375 = vector.multi_reduction <add>, %374, %cst_89 [1] : vector<8x128xf32> to vector<8xf32>
    %376 = vector.shape_cast %375 : vector<8xf32> to vector<8x1xf32>
    %377 = arith.mulf %370, %376 : vector<8x1xf32>
    %378 = math.log %377 : vector<8x1xf32>
    %379 = arith.addf %321, %378 : vector<8x1xf32>
    %380 = vector.broadcast %46 : vector<1x128xi32> to vector<8x128xi32>
    %381 = arith.cmpi eq, %380, %332 : vector<8x128xi32>
    %382 = vector.broadcast %48 : vector<1x128xi1> to vector<8x128xi1>
    %383 = arith.andi %382, %381 : vector<8x128xi1>
    %cst_90 = arith.constant 0.000000e+00 : f32
    %384 = vector.broadcast %cst_90 : f32 to vector<8x128xf32>
    %385 = arith.select %383, %5, %384 : vector<8x128xi1>, vector<8x128xf32>
    %cst_91 = arith.constant dense<0.000000e+00> : vector<8xf32>
    %386 = vector.multi_reduction <add>, %385, %cst_91 [1] : vector<8x128xf32> to vector<8xf32>
    %387 = vector.shape_cast %386 : vector<8xf32> to vector<8x1xf32>
    %388 = arith.subf %379, %387 : vector<8x1xf32>
    %cst_92 = arith.constant 0.000000e+00 : f32
    %389 = vector.shape_cast %50 : vector<1x128xi1> to vector<1x128xi1>
    %390 = vector.broadcast %389 : vector<1x128xi1> to vector<8x128xi1>
    %391 = vector.broadcast %cst_92 : f32 to vector<8x128xf32>
    %392 = arith.select %390, %5, %391 : vector<8x128xi1>, vector<8x128xf32>
    %cst_93 = arith.constant dense<0.000000e+00> : vector<8xf32>
    %393 = vector.multi_reduction <add>, %392, %cst_93 [1] : vector<8x128xf32> to vector<8xf32>
    %394 = vector.shape_cast %393 : vector<8xf32> to vector<8x1xf32>
    %395 = vector.extract_strided_slice %95 {offsets = [0, 0], sizes = [8, 3], strides = [1, 1]} : vector<8x6xi32> to vector<8x3xi32>
    %396 = arith.sitofp %395 : vector<8x3xi32> to vector<8x3xf32>
    %397 = vector.extract_strided_slice %95 {offsets = [0, 3], sizes = [8, 3], strides = [1, 1]} : vector<8x6xi32> to vector<8x3xi32>
    %398 = arith.sitofp %397 : vector<8x3xi32> to vector<8x3xf32>
    %399 = arith.mulf %396, %398 : vector<8x3xf32>
    %cst_94 = arith.constant dense<0.000000e+00> : vector<8xf32>
    %400 = vector.multi_reduction <add>, %399, %cst_94 [1] : vector<8x3xf32> to vector<8xf32>
    %401 = vector.shape_cast %400 : vector<8xf32> to vector<8x1xf32>
    %cst_95 = arith.constant dense<0.000000e+00> : vector<8xf32>
    %402 = vector.multi_reduction <add>, %398, %cst_95 [1] : vector<8x3xf32> to vector<8xf32>
    %403 = vector.shape_cast %402 : vector<8xf32> to vector<8x1xf32>
    %404 = arith.divf %401, %403 : vector<8x1xf32>
    %cst_96 = arith.constant 2.500000e+00 : f32
    %405 = vector.broadcast %cst_96 : f32 to vector<8x1xf32>
    %406 = arith.cmpf oge, %404, %405 : vector<8x1xf32>
    %407 = arith.extui %406 : vector<8x1xi1> to vector<8x1xi32>
    %408 = arith.sitofp %407 : vector<8x1xi32> to vector<8x1xf32>
    %cst_97 = arith.constant 0.000000e+00 : f32
    %409 = vector.broadcast %cst_97 : f32 to vector<8x1xf32>
    %410 = arith.maximumf %394, %409 : vector<8x1xf32>
    %411 = arith.mulf %394, %408 : vector<8x1xf32>
    %412 = arith.subf %410, %411 : vector<8x1xf32>
    %413 = math.absf %394 : vector<8x1xf32>
    %cst_98 = arith.constant 0.000000e+00 : f32
    %414 = vector.broadcast %cst_98 : f32 to vector<8x1xf32>
    %415 = arith.subf %414, %413 : vector<8x1xf32>
    %416 = math.exp %415 : vector<8x1xf32>
    %cst_99 = arith.constant 1.000000e+00 : f32
    %417 = vector.broadcast %cst_99 : f32 to vector<8x1xf32>
    %418 = arith.addf %417, %416 : vector<8x1xf32>
    %419 = math.log %418 : vector<8x1xf32>
    %420 = arith.addf %412, %419 : vector<8x1xf32>
    %421 = arith.addf %388, %420 : vector<8x1xf32>
    %cst_100 = arith.constant dense<0.000000e+00> : vector<1xf32>
    %422 = vector.multi_reduction <add>, %421, %cst_100 [0] : vector<8x1xf32> to vector<1xf32>
    %423 = vector.shape_cast %422 : vector<1xf32> to vector<1x1xf32>
    %cst_101 = arith.constant 0.0178571437 : f32
    %424 = vector.broadcast %cst_101 : f32 to vector<1x1xf32>
    %425 = arith.mulf %423, %424 : vector<1x1xf32>
    %426 = tpu.bitcast %425 : vector<1x1xf32> -> vector<1x1xi32>
    %cst_102 = arith.constant 0.000000e+00 : f32
    %427 = vector.broadcast %cst_102 : f32 to vector<8x1xf32>
    %428 = arith.cmpf ogt, %394, %427 : vector<8x1xf32>
    %429 = arith.extui %428 : vector<8x1xi1> to vector<8x1xi32>
    %c6_i32_103 = arith.constant 6 : i32
    %430 = vector.broadcast %c6_i32_103 : i32 to vector<1x128xi32>
    %431 = arith.cmpi eq, %6, %430 : vector<1x128xi32>
    %c0_i32_104 = arith.constant 0 : i32
    %432 = vector.shape_cast %431 : vector<1x128xi1> to vector<1x128xi1>
    %433 = vector.broadcast %432 : vector<1x128xi1> to vector<8x128xi1>
    %434 = vector.shape_cast %429 : vector<8x1xi32> to vector<8x1xi32>
    %435 = vector.broadcast %434 : vector<8x1xi32> to vector<8x128xi32>
    %436 = vector.broadcast %c0_i32_104 : i32 to vector<8x128xi32>
    %437 = arith.select %433, %435, %436 : vector<8x128xi1>, vector<8x128xi32>
    %438 = arith.addi %312, %437 : vector<8x128xi32>
    %c7_i32 = arith.constant 7 : i32
    %439 = vector.broadcast %c7_i32 : i32 to vector<1x128xi32>
    %440 = arith.cmpi eq, %6, %439 : vector<1x128xi32>
    %c0_i32_105 = arith.constant 0 : i32
    %441 = vector.shape_cast %426 : vector<1x1xi32> to vector<1x1xi32>
    %442 = vector.broadcast %441 : vector<1x1xi32> to vector<1x128xi32>
    %443 = vector.broadcast %c0_i32_105 : i32 to vector<1x128xi32>
    %444 = arith.select %440, %442, %443 : vector<1x128xi1>, vector<1x128xi32>
    %445 = vector.broadcast %444 : vector<1x128xi32> to vector<8x128xi32>
    %446 = arith.addi %438, %445 : vector<8x128xi32>
    %c0_106 = arith.constant 0 : index
    %c0_107 = arith.constant 0 : index
    %447 = vector.load %arg4[%c0_106, %c0_107] : memref<8x128xi32, #tpu.memory_space<vmem>>, vector<8x128xi32>
    tpu.vector_store %arg4[%c0_106, %c0_107], %446 {strides = array<i32>} : memref<8x128xi32, #tpu.memory_space<vmem>>, vector<8x128xi32>,
    return
  }
}

</mosaic_0001>

<bundles_post_ra>
// kernel: tpu_custom_call.1
= control target key start
LH: loop header
LB: loop body
LE: loop exit
PB: predicated region body
PF: predicated region fallthrough
CT: control target
= control target key end

     0   :  { %9 = vsyncpa [#allocation3], 0  ;;  %s902_s0 = inlined_call_operand.hbm [shape: f32[8,64], index: 0, kind: input, shape index: {}]   ;;  %s903_s1 = inlined_call_operand.hbm [shape: s32[8,6], index: 1, kind: input, shape index: {}]   ;;  %s904_s2 = inlined_call_operand.hbm [shape: f32[64,128], index: 2, kind: input, shape index: {}]   ;;  %s905_s3 = inlined_call_operand.vmem [shape: f32[1,128], index: 3, kind: input, shape index: {}]   ;;  %s906_s4 = inlined_call_operand.hbm [shape: s32[8,128], index: 4, kind: output, shape index: {}]  }
   0x1   :  { %10 = vsyncpa [#allocation6], 0 }
   0x2   :  { %11 = vsyncpa [#allocation4], 0  ;;  %s662_s15 = smov [#allocation5]   ;;  %s663_s17 = smov [#allocation2]  }
   0x3   :  { %s28_s16 = sshll.u32 %s662_s15, 4  ;;  %s18_s18 = sshll.u32 %s663_s17, 4  ;;  %s29_s16 = int_to_ptr.vmem [resolvable:$true] %s28_s16  ;;  %s19_s18 = int_to_ptr.vmem [resolvable:$true] %s18_s18 }
   0x4   :  { %s584_s19 = scalar_lea.vmem %s29_s16, 128  ;;  %p589_p1 = scmp.lt.s32.totalorder %s29_s16, %s29_s16 }
   0x5   :  { %p585_p0 = scmp.ne.s32.totalorder %s29_s16, %s584_s19  ;;  %p590_p2 = scmp.lt.s32.totalorder %s584_s19, %s584_s19 }
   0x7   :  { %p591_p3 = por %p590_p2, %p589_p1 }
   0x9   :  { %p592_p4 = pnand %p591_p3, %p585_p0 }
   0xb   :  { %595 = shalt.err (!%p592_p4)
}
   0xc   :  { %31 = dma.hbm_to_vmem [thread:$0]  %s903_s1, 128, %s29_s16, [#allocation6]  }
   0xd   :  { %s604_s22 = scalar_lea.vmem %s19_s18, 128  ;;  %p609_p6 = scmp.lt.s32.totalorder %s19_s18, %s19_s18 }
   0xe   :  { %p605_p5 = scmp.ne.s32.totalorder %s19_s18, %s604_s22  ;;  %p610_p7 = scmp.lt.s32.totalorder %s604_s22, %s604_s22 }
  0x10   :  { %p611_p8 = por %p610_p7, %p609_p6 }
  0x12   :  { %p612_p9 = pnand %p611_p8, %p605_p5 }
  0x14   :  { %615 = shalt.err (!%p612_p9)
}
  0x15   :  { %21 = dma.hbm_to_vmem [thread:$0]  %s902_s0, 128, %s19_s18, [#allocation3]  }
  0x16   :  { %s664_s25 = smov [#allocation7]  }
  0x17   :  { %s37_s26 = sshll.u32 %s664_s25, 4  ;;  %s38_s26 = int_to_ptr.vmem [resolvable:$true] %s37_s26 }
  0x18   :  { %s624_s27 = scalar_lea.vmem %s38_s26, 1024  ;;  %p629_p11 = scmp.lt.s32.totalorder %s38_s26, %s38_s26 }
  0x19   :  { %p625_p10 = scmp.ne.s32.totalorder %s38_s26, %s624_s27  ;;  %p630_p12 = scmp.lt.s32.totalorder %s624_s27, %s624_s27 }
  0x1b   :  { %p631_p13 = por %p630_p12, %p629_p11 }
  0x1d   :  { %p632_p0 = pnand %p631_p13, %p625_p10 }
  0x1f   :  { %635 = shalt.err (!%p632_p0)
}
  0x20   :  { %s665_s1 = smov 128   ;;  %s666_s28 = smov 8  }
  0x21   :  { %43 = dma.hbm_to_vmem [thread:$0]  %s904_s2, 1024, %s38_s26, [#allocation6], %s665_s1, %s665_s1, %s666_s28  }
  0x22   :  { %656 = dma.done.wait [#allocation3], 128  }
  0x23   :  { %657 = vsyncadd [#allocation3], 4294967168 }
  0x24   :  { %658 = dma.done.wait [#allocation6], 1152  }
  0x25   :  { %659 = vsyncadd [#allocation6], 4294966144  ;;  %v667_v0 = vmov 0.0   ;;  %vm668_vm0 = vmmov 0   ;;  %v63_v1 = vld [vmem:[#allocation7 + $0x38] sm:$0xff]  ;;  %v62_v2 = vld [vmem:[#allocation7 + $0x30] sm:$0xff]  ;;  %v145_v12 = vlaneseq }
  0x26   :  { %525 = vmatprep.subr.mxu0 %v667_v0  ;;  %541 = vmatprep.mubr.msk.f32.mxu0 %vm668_vm0, %v667_v0  ;;  %v61_v3 = vld [vmem:[#allocation7 + $0x28] sm:$0xff]  ;;  %v60_v4 = vld [vmem:[#allocation7 + $0x20] sm:$0xff]  ;;  %v59_v5 = vld [vmem:[#allocation7 + $0x18] sm:$0xff]  ;;  %vm71_vm1 = vcmask 523264   ;;  %v669_v10 = vmov 0   ;;  %v670_v11 = vmov 1  }
  0x27   :  { %526 = vmatpush3.msra.mxu0 %v63_v1  ;;  %v58_v6 = vld [vmem:[#allocation7 + $0x10] sm:$0xff]  ;;  %v57_v7 = vld [vmem:[#allocation7 + $0x8] sm:$0xff]  ;;  %v56_v8 = vld [vmem:[#allocation7] sm:$0xff]  ;;  %559 = vset.pattern.permute.xlu1 %v669_v10  ;;  %v721_v13 = vand.u32 127, %v145_v12  ;;  %s676_s5 = smov [#allocation8]  }
  0x28   :  { %527 = vmatprep.subr.mxu0 %v667_v0  ;;  %v55_v9 = vld [vmem:[#allocation2] sm:$0xff]  ;;  %560 = vset.pattern.permute.xlu0 %v670_v11  ;;  %s503_s6 = sshll.u32 %s676_s5, 4  ;;  %s504_s6 = int_to_ptr.vmem [resolvable:$true] %s503_s6 }
  0x29   :  { %528 = vmatpush3.msra.mxu0 %v62_v2  ;;  %vm147_vm2 = vcmp.ge.s32.totalorder %v721_v13, 6  ;;  %vm150_vm3 = vcmp.ge.s32.totalorder %v721_v13, 12  ;;  %vm154_vm4 = vcmp.ge.s32.totalorder %v721_v13, 18  ;;  %vm158_vm5 = vcmp.ge.s32.totalorder %v721_v13, 29  ;;  %v513_v34 = vld [vmem:[%s905_s3] ss:$0 sm:$0xff]  ;;  %p641_p2 = scmp.lt.s32.totalorder %s504_s6, %s504_s6 }
  0x2a   :  { %529 = vmatprep.subr.mxu0 %v667_v0  ;;  %v148_v14 = vsel %vm147_vm2, 1, %v669_v10  ;;  %v151_v15 = vsel %vm150_vm3, 1, %v669_v10  ;;  %v155_v18 = vsel %vm154_vm4, 1, %v669_v10  ;;  %v159_v21 = vsel %vm158_vm5, 1, %v669_v10  ;;  %s673_s3 = smov 125   ;;  %s636_s7 = scalar_lea.vmem %s504_s6, 128 }
  0x2b   :  { %530 = vmatpush3.msra.mxu0 %v61_v3  ;;  %v149_v16 = vmul.u32 6, %v148_v14  ;;  %v152_v17 = vmul.u32 6, %v151_v15  ;;  %vm162_vm6 = vcmp.ge.s32.totalorder %v721_v13, 40  ;;  %vm166_vm7 = vcmp.ge.s32.totalorder %v721_v13, 51  ;;  %p637_p1 = scmp.ne.s32.totalorder %s504_s6, %s636_s7  ;;  %p642_p3 = scmp.lt.s32.totalorder %s636_s7, %s636_s7 }
  0x2c   :  { %531 = vmatprep.subr.mxu0 %v667_v0  ;;  %v156_v20 = vmul.u32 6, %v155_v18  ;;  %v160_v23 = vmul.u32 11, %v159_v21  ;;  %v163_v24 = vsel %vm162_vm6, 1, %v669_v10  ;;  %v167_v27 = vsel %vm166_vm7, 1, %v669_v10 }
  0x2d   :  { %532 = vmatpush3.msra.mxu0 %v60_v4  ;;  %v153_v19 = vadd.s32 %v152_v17, %v149_v16  ;;  %v164_v26 = vmul.u32 11, %v163_v24  ;;  %v168_v29 = vmul.u32 11, %v167_v27  ;;  %vm170_vm8 = vcmp.ge.s32.totalorder %v721_v13, 52  ;;  %v811_v4 = vld [vmem:[#allocation5] sm:$0xff]  ;;  %p643_p4 = por %p642_p3, %p641_p2 }
  0x2e   :  { %533 = vmatprep.subr.mxu0 %v667_v0  ;;  %v171_v31 = vsel %vm170_vm8, 1, %v669_v10  ;;  %vm174_vm9 = vcmp.lt.s32.totalorder %v721_v13, 51  ;;  %vm181_vm10 = vcmp.lt.s32.totalorder %v721_v13, 18  ;;  %vm183_vm12 = vcmp.lt.s32.totalorder %v721_v13, 29 }
  0x2f   :  { %534 = vmatpush3.msra.mxu0 %v59_v5  ;;  %v157_v22 = vadd.s32 %v156_v20, %v153_v19  ;;  %vm179_vm13 = vcmp.lt.s32.totalorder %v721_v13, 12  ;;  %vm764_vm14 = vmand %vm150_vm3, %vm181_vm10  ;;  %vm177_vm0 = vcmp.lt.s32.totalorder %v721_v13, 6  ;;  %vm185_vm3 = vcmp.lt.s32.totalorder %v721_v13, 40  ;;  %p644_p5 = pnand %p643_p4, %p637_p1 }
  0x30   :  { %535 = vmatprep.subr.mxu0 %v667_v0  ;;  %vm773_vm15 = vmand %vm154_vm4, %vm183_vm12  ;;  %v671_v5 = vmov 2   ;;  %vm285_vm12 = vcmp.eq.s32.totalorder %v721_v13, 2 }
  0x31   :  { %536 = vmatpush3.msra.mxu0 %v58_v6  ;;  %v161_v25 = vadd.s32 %v160_v23, %v157_v22  ;;  %vm803_vm4 = vmand %vm158_vm5, %vm185_vm3  ;;  %v672_v6 = vmov 4  }
  0x32   :  { %537 = vmatprep.subr.mxu0 %v667_v0 }
  0x33   :  { %538 = vmatpush3.msra.mxu0 %v57_v7  ;;  %v165_v28 = vadd.s32 %v164_v26, %v161_v25 }
  0x34   :  { %539 = vmatprep.subr.mxu0 %v667_v0 }
  0x35   :  { %540 = vmatpush3.msra.mxu0 %v56_v8  ;;  %v169_v30 = vadd.s32 %v168_v29, %v165_v28 }
  0x36   :  { %542 = vmatmul.mubr.msk.f32.vlgmr.msra.gmra.mxu0 %vm71_vm1, %v55_v9  ;;  %vm780_vm1 = vmand %vm147_vm2, %vm179_vm13  ;;  %vm216_vm13 = vcmp.eq.s32.totalorder %v721_v13, 0 }
  0x37   :  { %v172_v32 = vadd.s32 %v171_v31, %v169_v30  ;;  %vm797_vm2 = vmand %vm162_vm6, %vm174_vm9 }
  0x39   :  { %v748_v33 = vsub.s32 %v721_v13, %v172_v32 }
  0x3b   :  { %v192_v37 = vsub.s32 15, %v748_v33 }
  0x3d   :  { %v193_v42 = vsel %vm174_vm9, %v192_v37, 0  ;;  %v675_v37 = vmov 5  }
  0xf6   :  { %v141_v35 = vpop.f32.mrf.mxu0 }
  0xf7   :  { %v753_v36 = vadd.f32 %v513_v34, %v141_v35  ;;  %v448_v34 = vcvt.s32.f32 %v811_v4  ;;  %v674_v35 = vmov 3  }
  0xf8   :  { %v543_v38 = vpop.f32.mrf.mxu0 }
  0xf9   :  { %vm189_vm11 = vcmp.lt.s32.totalorder %v753_v36, 0  ;;  %v190_v39 = vxor.u32 2147483647, %v753_v36 }
  0xfb   :  { %v191_v41 = vsel %vm189_vm11, %v190_v39, %v753_v36 }
  0xfc   :  { %v194_v43 = vand.u32 4294967280, %v191_v41 }
  0xfe   :  { %v195_v46 = vor.u32 %v194_v43, %v193_v42 }
 0x100   :  { %v268_v47 = vsel %vm764_vm14, %v195_v46, 2147483648  ;;  %v199_v48 = vsel %vm177_vm0, %v195_v46, 2147483648  ;;  %v303_v49 = vsel %vm773_vm15, %v195_v46, 2147483648  ;;  %v233_v50 = vsel %vm780_vm1, %v195_v46, 2147483648 }
 0x101   :  { %v270_v52 = vshra.s32 %v268_v47, 16  ;;  %v201_v53 = vshra.s32 %v199_v48, 16  ;;  %v305_v57 = vshra.s32 %v303_v49, 16  ;;  %v235_v58 = vshra.s32 %v233_v50, 16 }
 0x102   :  { %v373_v59 = vsel %vm797_vm2, %v195_v46, 2147483648  ;;  %v338_v60 = vsel %vm803_vm4, %v195_v46, 2147483648  ;;  %v269_v7 = vand.u32 65535, %v268_v47  ;;  %v200_v8 = vand.u32 65535, %v199_v48 }
 0x103   :  { %v272_v55 = vcvt.s32.f32 %v270_v52  ;;  %v203_v56 = vcvt.s32.f32 %v201_v53  ;;  %v307_v61 = vcvt.s32.f32 %v305_v57  ;;  %v237_v62 = vcvt.s32.f32 %v235_v58 }
 0x104   :  { %v375_v63 = vshra.s32 %v373_v59, 16  ;;  %v340_v1 = vshra.s32 %v338_v60, 16  ;;  %v271_v12 = vcvt.s32.f32 %v269_v7  ;;  %v202_v14 = vcvt.s32.f32 %v200_v8 }
 0x105   :  { %273 = vmax.xlane.f32.xlu1 %v272_v55  ;;  %204 = vmax.xlane.f32.xlu0 %v203_v56  ;;  %v234_v15 = vand.u32 65535, %v233_v50  ;;  %v339_v21 = vand.u32 65535, %v338_v60  ;;  %v304_v22 = vand.u32 65535, %v303_v49  ;;  %v374_v28 = vand.u32 65535, %v373_v59 }
 0x106   :  { %v377_v2 = vcvt.s32.f32 %v375_v63  ;;  %v342_v3 = vcvt.s32.f32 %v340_v1 }
 0x107   :  { %v236_v20 = vcvt.s32.f32 %v234_v15  ;;  %v341_v26 = vcvt.s32.f32 %v339_v21  ;;  %v306_v27 = vcvt.s32.f32 %v304_v22  ;;  %v376_v31 = vcvt.s32.f32 %v374_v28 }
 0x109   :  { %308 = vmax.xlane.f32.xlu1 %v307_v61  ;;  %238 = vmax.xlane.f32.xlu0 %v237_v62 }
 0x10d   :  { %378 = vmax.xlane.f32.xlu1 %v377_v2  ;;  %343 = vmax.xlane.f32.xlu0 %v342_v3 }
 0x11e   :  { %228 = vperm.xlu1 %559, %v811_v4  }
 0x122   :  { %561 = vset.pattern.permute.xlu1 %v671_v5 }
 0x123   :  { %263 = vperm.xlu0 %560, %v811_v4  }
 0x127   :  { %563 = vset.pattern.permute.xlu0 %v672_v6 }
 0x18e   :  { %v274_v9 = vpop.xlane.xlu1 %273  ;;  %v205_v11 = vpop.xlane.xlu0 %204 }
 0x18f   :  { %vm275_vm5 = vcmp.eq.f32.partialorder %v272_v55, %v274_v9  ;;  %vm206_vm6 = vcmp.eq.f32.partialorder %v203_v56, %v205_v11  ;;  %v280_v41 = vcvt.f32.s32 %v274_v9  ;;  %v211_v42 = vcvt.f32.s32 %v205_v11 }
 0x190   :  { %v276_v16 = vsel %vm275_vm5, %v271_v12, -inf  ;;  %v207_v17 = vsel %vm206_vm6, %v202_v14, -inf  ;;  %vm250_vm6 = vcmp.eq.s32.totalorder %v721_v13, 1 }
 0x191   :  { %277 = vmax.xlane.f32.xlu1 %v276_v16  ;;  %208 = vmax.xlane.f32.xlu0 %v207_v17  ;;  %v281_v47 = vshll.u32 %v280_v41, 16  ;;  %v212_v48 = vshll.u32 %v211_v42, 16 }
 0x192   :  { %v309_v18 = vpop.xlane.xlu1 %308  ;;  %v239_v19 = vpop.xlane.xlu0 %238 }
 0x193   :  { %vm240_vm7 = vcmp.eq.f32.partialorder %v237_v62, %v239_v19  ;;  %vm310_vm8 = vcmp.eq.f32.partialorder %v307_v61, %v309_v18  ;;  %v315_v52 = vcvt.f32.s32 %v309_v18  ;;  %v245_v53 = vcvt.f32.s32 %v239_v19 }
 0x194   :  { %v241_v23 = vsel %vm240_vm7, %v236_v20, -inf  ;;  %v311_v30 = vsel %vm310_vm8, %v306_v27, -inf  ;;  %vm320_vm7 = vcmp.eq.s32.totalorder %v721_v13, 3 }
 0x195   :  { %242 = vmax.xlane.f32.xlu0 %v241_v23  ;;  %v316_v1 = vshll.u32 %v315_v52, 16 }
 0x196   :  { %v379_v24 = vpop.xlane.xlu1 %378  ;;  %v344_v25 = vpop.xlane.xlu0 %343 }
 0x197   :  { %vm345_vm10 = vcmp.eq.f32.partialorder %v342_v3, %v344_v25  ;;  %vm380_vm11 = vcmp.eq.f32.partialorder %v377_v2, %v379_v24  ;;  %v385_v55 = vcvt.f32.s32 %v379_v24  ;;  %v350_v56 = vcvt.f32.s32 %v344_v25 }
 0x198   :  { %v346_v29 = vsel %vm345_vm10, %v341_v26, -inf  ;;  %v381_v32 = vsel %vm380_vm11, %v376_v31, -inf  ;;  %v246_v2 = vshll.u32 %v245_v53, 16 }
 0x199   :  { %347 = vmax.xlane.f32.xlu1 %v346_v29  ;;  %312 = vmax.xlane.f32.xlu0 %v311_v30  ;;  %v386_v5 = vshll.u32 %v385_v55, 16  ;;  %v351_v6 = vshll.u32 %v350_v56, 16 }
 0x19a   :  { %v822_v38 = vpop.permute.xlu1 %228 }
 0x19d   :  { %382 = vmax.xlane.f32.xlu1 %v381_v32 }
 0x19e   :  { %v824_v39 = vpop.permute.xlu0 %263 }
 0x1ae   :  { %298 = vperm.xlu1 %561, %v811_v4  }
 0x1af   :  { %368 = vperm.xlu0 %563, %v811_v4  }
 0x1b2   :  { %450 = vrot.lane.b32.xlu1 %v448_v34, %s673_s3 }
 0x1b3   :  { %562 = vset.pattern.permute.xlu1 %v674_v35  ;;  %565 = vset.pattern.permute.xlu0 %v675_v37 }
 0x1b6   :  { %333 = vperm.xlu1 %562, %v811_v4  }
 0x1ba   :  { %564 = vset.pattern.permute.xlu1 %v675_v37 }
 0x1bb   :  { %403 = vperm.xlu1 %564, %v811_v4  }
 0x21a   :  { %v278_v43 = vpop.xlane.xlu1 %277  ;;  %v209_v46 = vpop.xlane.xlu0 %208 }
 0x21b   :  { %v279_v49 = vcvt.f32.s32 %v278_v43  ;;  %v210_v50 = vcvt.f32.s32 %v209_v46 }
 0x21d   :  { %v282_v57 = vadd.s32 %v281_v47, %v279_v49  ;;  %v213_v58 = vadd.s32 %v212_v48, %v210_v50 }
 0x21e   :  { %v243_v59 = vpop.xlane.xlu0 %242 }
 0x21f   :  { %v283_v60 = vand.u32 15, %v282_v57  ;;  %v290_v61 = vand.u32 4294967280, %v282_v57  ;;  %v214_v62 = vand.u32 15, %v213_v58  ;;  %v220_v63 = vand.u32 4294967280, %v213_v58 }
 0x220   :  { %v244_v3 = vcvt.f32.s32 %v243_v59 }
 0x221   :  { %v284_v7 = vsub.s32 15, %v283_v60  ;;  %v215_v8 = vsub.s32 15, %v214_v62  ;;  %vm221_vm3 = vcmp.lt.s32.totalorder %v220_v63, 0  ;;  %v222_v9 = vxor.u32 2147483647, %v220_v63 }
 0x222   :  { %v247_v11 = vadd.s32 %v246_v2, %v244_v3  ;;  %v348_v12 = vpop.xlane.xlu1 %347  ;;  %v313_v14 = vpop.xlane.xlu0 %312  ;;  %vm291_vm5 = vcmp.lt.s32.totalorder %v290_v61, 0  ;;  %v292_v21 = vxor.u32 2147483647, %v290_v61 }
 0x223   :  { %v349_v15 = vcvt.f32.s32 %v348_v12  ;;  %v223_v16 = vsel %vm221_vm3, %v222_v9, %v220_v63  ;;  %v314_v19 = vcvt.f32.s32 %v313_v14  ;;  %v288_v20 = vsel %vm285_vm12, %v284_v7, 0 }
 0x224   :  { %v248_v17 = vand.u32 15, %v247_v11  ;;  %v255_v18 = vand.u32 4294967280, %v247_v11  ;;  %v219_v22 = vsel %vm216_vm13, %v215_v8, 0  ;;  %v226_v28 = vsel %vm177_vm0, %v223_v16, %v753_v36 }
 0x225   :  { %v352_v23 = vadd.s32 %v351_v6, %v349_v15  ;;  %v317_v26 = vadd.s32 %v316_v1, %v314_v19  ;;  %v293_v42 = vsel %vm291_vm5, %v292_v21, %v290_v61  ;;  %vm355_vm12 = vcmp.eq.s32.totalorder %v721_v13, 4 }
 0x226   :  { %v249_v24 = vsub.s32 15, %v248_v17  ;;  %vm256_vm8 = vcmp.lt.s32.totalorder %v255_v18, 0  ;;  %v257_v25 = vxor.u32 2147483647, %v255_v18  ;;  %v383_v27 = vpop.xlane.xlu1 %382  ;;  %vm390_vm13 = vcmp.eq.s32.totalorder %v721_v13, 5 }
 0x227   :  { %v353_v29 = vand.u32 15, %v352_v23  ;;  %v360_v30 = vand.u32 4294967280, %v352_v23  ;;  %v384_v31 = vcvt.f32.s32 %v383_v27  ;;  %v318_v37 = vand.u32 15, %v317_v26 }
 0x228   :  { %v253_v32 = vsel %vm250_vm6, %v249_v24, 0  ;;  %v258_v35 = vsel %vm256_vm8, %v257_v25, %v255_v18  ;;  %v325_v41 = vand.u32 4294967280, %v317_v26  ;;  %v230_v21 = vsel %vm177_vm0, %v822_v38, 4294967295 }
 0x229   :  { %v254_v43 = vadd.s32 %v253_v32, %v219_v22  ;;  %v260_v46 = vadd.f32 %v258_v35, %v223_v16  ;;  %v261_v47 = vsel %vm780_vm1, %v258_v35, %v226_v28  ;;  %vm361_vm10 = vcmp.lt.s32.totalorder %v360_v30, 0 }
 0x22a   :  { %v362_v48 = vxor.u32 2147483647, %v360_v30  ;;  %v296_v49 = vsel %vm764_vm14, %v293_v42, %v261_v47  ;;  %v319_v50 = vsub.s32 15, %v318_v37  ;;  %v354_v52 = vsub.s32 15, %v353_v29  ;;  %v299_v18 = vpop.permute.xlu1 %298  ;;  %v369_v27 = vpop.permute.xlu0 %368 }
 0x22b   :  { %v289_v53 = vadd.s32 %v288_v20, %v254_v43  ;;  %v295_v55 = vadd.f32 %v293_v42, %v260_v46  ;;  %vm326_vm11 = vcmp.lt.s32.totalorder %v325_v41, 0  ;;  %v327_v57 = vxor.u32 2147483647, %v325_v41 }
 0x22c   :  { %v323_v56 = vsel %vm320_vm7, %v319_v50, 0  ;;  %v387_v58 = vadd.s32 %v386_v5, %v384_v31  ;;  %v363_v59 = vsel %vm361_vm10, %v362_v48, %v360_v30  ;;  %v358_v1 = vsel %vm355_vm12, %v354_v52, 0 }
 0x22d   :  { %v324_v60 = vadd.s32 %v323_v56, %v289_v53  ;;  %v328_v61 = vsel %vm326_vm11, %v327_v57, %v325_v41  ;;  %v265_v23 = vsel %vm780_vm1, %v824_v39, %v230_v21  ;;  %vm175_vm5 = vcmp.eq.s32.totalorder %v721_v13, 51 }
 0x22e   :  { %v388_v62 = vand.u32 15, %v387_v58  ;;  %v395_v63 = vand.u32 4294967280, %v387_v58  ;;  %v330_v2 = vadd.f32 %v328_v61, %v295_v55  ;;  %v331_v3 = vsel %vm773_vm15, %v328_v61, %v296_v49  ;;  %v451_v20 = vpop.permute.xlu1 %450 }
 0x22f   :  { %v366_v6 = vsel %vm803_vm4, %v363_v59, %v331_v3  ;;  %v359_v5 = vadd.s32 %v358_v1, %v324_v60  ;;  %v300_v24 = vsel %vm764_vm14, %v299_v18, %v265_v23  ;;  %v445_v40 = vsel %vm175_vm5, %v753_v36, 0.0 }
 0x230   :  { %v389_v7 = vsub.s32 15, %v388_v62  ;;  %vm396_vm3 = vcmp.lt.s32.totalorder %v395_v63, 0  ;;  %v397_v8 = vxor.u32 2147483647, %v395_v63  ;;  %v365_v9 = vadd.f32 %v363_v59, %v330_v2 }
 0x231   :  { %v453_v32 = vmul.f32 %v451_v20, %v448_v34 }
 0x232   :  { %v393_v11 = vsel %vm390_vm13, %v389_v7, 0  ;;  %v398_v12 = vsel %vm396_vm3, %v397_v8, %v395_v63  ;;  %v334_v22 = vpop.permute.xlu1 %333 }
 0x233   :  { %v401_v14 = vsel %vm797_vm2, %v398_v12, %v366_v6  ;;  %v854_v15 = vadd.f32 %v398_v12, %v365_v9  ;;  %v856_v16 = vadd.s32 %v393_v11, %v359_v5  ;;  %v335_v26 = vsel %vm773_vm15, %v334_v22, %v300_v24 }
 0x234   :  { %v406_v17 = vsub.f32 %v753_v36, %v401_v14  ;;  %v370_v39 = vsel %vm803_vm4, %v369_v27, %v335_v26 }
 0x236   :  { %v407_v19 = vmul.f32 1.442695, %v406_v17  ;;  %v404_v28 = vpop.permute.xlu1 %403 }
 0x237   :  { %v405_v30 = vsel %vm797_vm2, %v404_v28, %v370_v39 }
 0x238   :  { %566 = vpow2.f32 %v407_v19  ;;  %vm435_vm6 = vcmp.eq.s32.totalorder %v748_v33, %v405_v30 }
 0x245   :  { %v567_v25 = vpop.eup %566 }
 0x246   :  { %v416_v29 = vsel %vm764_vm14, %v567_v25, 0.0  ;;  %v409_v38 = vsel %vm177_vm0, %v567_v25, 0.0  ;;  %v412_v31 = vsel %vm780_vm1, %v567_v25, 0.0  ;;  %vm438_vm14 = vmand %vm174_vm9, %vm435_vm6  ;;  %vm454_vm0 = vcmask 23552  }
 0x247   :  { %417 = vadd.xlane.f32.xlu0 %v416_v29  ;;  %410 = vadd.xlane.f32.xlu1 %v409_v38  ;;  %v439_v35 = vsel %vm438_vm14, %v753_v36, 0.0  ;;  %v455_v45 = vsel %vm454_vm0, %v453_v32, 0.0  ;;  %v420_v37 = vsel %vm773_vm15, %v567_v25, 0.0  ;;  %v424_v33 = vsel %vm803_vm4, %v567_v25, 0.0 }
 0x248   :  { %v428_v41 = vsel %vm797_vm2, %v567_v25, 0.0  ;;  %v458_v4 = vsel %vm454_vm0, %v451_v20, 0.0  ;;  %vm488_vm1 = vcmp.eq.s32.totalorder %v721_v13, 6  ;;  %vm493_vm2 = vcmp.eq.s32.totalorder %v721_v13, 7 }
 0x24b   :  { %413 = vadd.xlane.f32.xlu1 %v412_v31 }
 0x24f   :  { %446 = vadd.xlane.f32.xlu1 %v445_v40 }
 0x253   :  { %440 = vadd.xlane.f32.xlu1 %v439_v35 }
 0x257   :  { %456 = vadd.xlane.f32.xlu1 %v455_v45 }
 0x25b   :  { %421 = vadd.xlane.f32.xlu1 %v420_v37 }
 0x25f   :  { %425 = vadd.xlane.f32.xlu1 %v424_v33 }
 0x263   :  { %429 = vadd.xlane.f32.xlu1 %v428_v41 }
 0x267   :  { %459 = vadd.xlane.f32.xlu1 %v458_v4 }
 0x2d0   :  { %v411_v34 = vpop.xlane.xlu1 %410  ;;  %v418_v54 = vpop.xlane.xlu0 %417 }
 0x2d4   :  { %v414_v36 = vpop.xlane.xlu1 %413 }
 0x2d5   :  { %v415_v49 = vmul.f32 %v414_v36, %v411_v34 }
 0x2d7   :  { %v419_v52 = vmul.f32 %v418_v54, %v415_v49 }
 0x2d8   :  { %v447_v42 = vpop.xlane.xlu1 %446 }
 0x2d9   :  { %v469_v43 = vand.u32 2147483647, %v447_v42  ;;  %v466_v6 = vmax.f32 %v447_v42, 0.0  ;;  %vm486_vm15 = vcmp.gt.f32.partialorder %v447_v42, 0.0 }
 0x2da   :  { %v487_v21 = vsel %vm486_vm15, 1, %v669_v10 }
 0x2db   :  { %v470_v46 = vsub.f32 0.0, %v469_v43  ;;  %v491_v23 = vsel %vm488_vm1, %v487_v21, 0 }
 0x2dc   :  { %v441_v47 = vpop.xlane.xlu1 %440  ;;  %v492_v24 = vadd.s32 %v491_v23, %v856_v16 }
 0x2dd   :  { %v471_v48 = vmul.f32 1.442695, %v470_v46 }
 0x2df   :  { %568 = vpow2.f32 %v471_v48 }
 0x2e0   :  { %v457_v44 = vpop.xlane.xlu1 %456 }
 0x2e4   :  { %v422_v50 = vpop.xlane.xlu1 %421 }
 0x2e5   :  { %v423_v55 = vmul.f32 %v422_v50, %v419_v52 }
 0x2e8   :  { %v426_v53 = vpop.xlane.xlu1 %425 }
 0x2e9   :  { %v427_v51 = vmul.f32 %v426_v53, %v423_v55 }
 0x2ec   :  { %v430_v56 = vpop.xlane.xlu1 %429  ;;  %v569_v58 = vpop.eup %568 }
 0x2ed   :  { %v431_v57 = vmul.f32 %v430_v56, %v427_v51  ;;  %v473_v60 = vadd.f32 1.0, %v569_v58 }
 0x2ef   :  { %570 = vlog2.f32 %v431_v57 }
 0x2f0   :  { %v460_v59 = vpop.xlane.xlu1 %459 }
 0x2f1   :  { %572 = vrcp.f32 %v460_v59 }
 0x2f2   :  { %574 = vlog2.f32 %v473_v60 }
 0x2fc   :  { %v571_v61 = vpop.eup %570 }
 0x2fd   :  { %v433_v63 = vmul.f32 0.6931472, %v571_v61 }
 0x2fe   :  { %v573_v62 = vpop.eup %572 }
 0x2ff   :  { %v462_v1 = vmul.f32 %v573_v62, %v457_v44  ;;  %v575_v2 = vpop.eup %574  ;;  %v434_v7 = vadd.f32 %v433_v63, %v854_v15 }
 0x300   :  { %v475_v9 = vmul.f32 0.6931472, %v575_v2 }
 0x301   :  { %vm463_vm9 = vcmp.ge.f32.partialorder %v462_v1, 2.5  ;;  %v442_v11 = vsub.f32 %v434_v7, %v441_v47 }
 0x302   :  { %v515_v3 = vsel %vm463_vm9, 1.0, %v667_v0 }
 0x303   :  { %v467_v8 = vmul.f32 %v515_v3, %v447_v42 }
 0x305   :  { %v468_v5 = vsub.f32 %v466_v6, %v467_v8 }
 0x307   :  { %v476_v12 = vadd.f32 %v475_v9, %v468_v5 }
 0x309   :  { %v477_v14 = vadd.f32 %v476_v12, %v442_v11 }
 0x30b   :  { %v478_v17 = vrot.slane %v477_v14, 4 }
 0x30d   :  { %v479_v18 = vadd.f32 %v478_v17, %v477_v14 }
 0x30f   :  { %v480_v19 = vrot.slane %v479_v18, 2 }
 0x311   :  { %v481_v20 = vadd.f32 %v480_v19, %v479_v18 }
 0x313   :  { %v482_v22 = vrot.slane %v481_v20, 1 }
 0x315   :  { %v483_v0 = vadd.f32 %v482_v22, %v481_v20 }
 0x317   :  { %v484_v15 = vmul.f32 0.017857144, %v483_v0 }
 0x319   :  { %v494_v25 = vsel %vm493_vm2, %v484_v15, 0 }
 0x31a   :  { %v495_v26 = vadd.s32 %v494_v25, %v492_v24 }
 0x31c   :  { %496 = vst [vmem:[#allocation8] sm:$0xff] %v495_v26 }
 0x31d   :  { %647 = shalt.err (!%p644_p5)
}
 0x31e   :  { %506 = dma.vmem_to_hbm [thread:$0]  %s504_s6, 128, %s906_s4, [#allocation4]  }
 0x31f   :  { %660 = dma.done.wait [#allocation4], 128  }
 0x320   :  { %661 = vsyncadd [#allocation4], 4294967168 }
 0x321   :  { %510 = vsyncpa [#allocation3], 1 }
 0x322   :  { %511 = vsyncpa [#allocation6], 1 }
 0x323   :  { %512 = vsyncpa [#allocation4], 1 }

</bundles_post_ra>
